<compile_context>
chip_gen: v5e
topology: v5e:2x2
jax: 0.10.0
libtpu: 0.0.40
codegen_flags: <defaults>
</compile_context>

<pallas_src>
import jax
import jax.numpy as jnp
import numpy as np
from jax.experimental import pallas as pl
from jax.experimental.pallas import tpu as pltpu


def _round_up(a, b):
    return ((a + b - 1) // b) * b


def _spectral_mul_kernel(xr_ref, xi_ref, wr_ref, wi_ref, or_ref, oi_ref):
    # Blocks: x (B, Cin, Tm), w (Cin, Cout, Tm), out (B, Cout, Tm).
    # Modes sit on the 128-lane axis -> pure VPU broadcast multiply-accumulate,
    # with a static unroll over the (small) Cin contraction axis.
    xr = xr_ref[...]
    xi = xi_ref[...]
    wr = wr_ref[...]
    wi = wi_ref[...]

    cin = xr.shape[1]
    acc_r = jnp.zeros(or_ref.shape, jnp.float32)
    acc_i = jnp.zeros(oi_ref.shape, jnp.float32)
    for i in range(cin):                       # static unroll (Cin is small)
        xri = xr[:, i, None, :]                # (B, 1, Tm)
        xii = xi[:, i, None, :]                # (B, 1, Tm)
        wri = wr[None, i, :, :]                # (1, Cout, Tm)
        wii = wi[None, i, :, :]                # (1, Cout, Tm)
        acc_r = acc_r + (xri * wri - xii * wii)    # real part of complex product
        acc_i = acc_i + (xri * wii + xii * wri)    # imag part of complex product

    or_ref[...] = acc_r
    oi_ref[...] = acc_i


def spectral_conv1d_pro(x, w_real, w_imag, modes1, *, max_mode_tile=512):
    """x: (B, Cin, N) float32; w_real/w_imag: (Cin, Cout, modes1) float32."""
    B, Cin, N = x.shape
    Cout = w_real.shape[1]
    M = modes1
    n_freq = N // 2 + 1

    # TODO(synk): rfft / irfft have no Pallas TPU equivalent; kept in plain JAX.
    x_ft = jnp.fft.rfft(x, axis=-1)                     # (B, Cin, n_freq) c64
    xr = jnp.real(x_ft[:, :, :M]).astype(jnp.float32)   # (B, Cin, M)
    xi = jnp.imag(x_ft[:, :, :M]).astype(jnp.float32)   # (B, Cin, M)

    # Lane-dense mode tiling: Tm is a multiple of 128, Mp a multiple of Tm.
    Tm = min(max_mode_tile, _round_up(M, 128))
    Mp = _round_up(M, Tm)
    pad_m = Mp - M

    # Zero-pad on the mode axis.  Zero weight padding guarantees the padded
    # output modes are exactly zero (matching the reference out_ft zeros).
    xr = jnp.pad(xr, ((0, 0), (0, 0), (0, pad_m)))
    xi = jnp.pad(xi, ((0, 0), (0, 0), (0, pad_m)))
    wr = jnp.pad(w_real.astype(jnp.float32), ((0, 0), (0, 0), (0, pad_m)))
    wi = jnp.pad(w_imag.astype(jnp.float32), ((0, 0), (0, 0), (0, pad_m)))

    grid = (Mp // Tm,)
    x_spec = pl.BlockSpec((B, Cin, Tm), lambda t: (0, 0, t))
    w_spec = pl.BlockSpec((Cin, Cout, Tm), lambda t: (0, 0, t))
    o_spec = pl.BlockSpec((B, Cout, Tm), lambda t: (0, 0, t))

    # 4 mul + 4 add per (b, i, o, m) pair of complex MACs.
    flops = 8 * B * Cin * Cout * Mp
    bytes_accessed = 4 * Mp * 2 * (B * Cin + Cin * Cout + B * Cout)

    out_r, out_i = pl.pallas_call(
        _spectral_mul_kernel,
        out_shape=(
            jax.ShapeDtypeStruct((B, Cout, Mp), jnp.float32),
            jax.ShapeDtypeStruct((B, Cout, Mp), jnp.float32),
        ),
        grid_spec=pltpu.PrefetchScalarGridSpec(
            num_scalar_prefetch=0,
            grid=grid,
            in_specs=[x_spec, x_spec, w_spec, w_spec],
            out_specs=(o_spec, o_spec),
        ),
        compiler_params=pltpu.CompilerParams(
            dimension_semantics=("parallel",)),
        cost_estimate=pl.CostEstimate(
            flops=flops, transcendentals=0, bytes_accessed=bytes_accessed),
    )(xr, xi, wr, wi)

    out_ft = (out_r + 1j * out_i).astype(jnp.complex64)  # (B, Cout, Mp)
    if Mp >= n_freq:
        # Modes in [M, n_freq) are already exactly zero (zero-padded weights).
        out_ft = out_ft[:, :, :n_freq]
    else:
        out_ft = jnp.pad(out_ft[:, :, :M],
                         ((0, 0), (0, 0), (0, n_freq - M)))
    return jnp.fft.irfft(out_ft, n=N, axis=-1)           # (B, Cout, N) f32


def _reference(x, w_real, w_imag, modes1):
    """Pure-JAX reference matching the PyTorch forward exactly."""
    B, Cin, N = x.shape
    Cout = w_real.shape[1]
    w = (w_real + 1j * w_imag).astype(jnp.complex64)
    x_ft = jnp.fft.rfft(x, axis=-1)
    out_modes = jnp.einsum('bix,iox->box', x_ft[:, :, :modes1], w)
    out_ft = jnp.zeros((B, Cout, N // 2 + 1), dtype=jnp.complex64)
    out_ft = out_ft.at[:, :, :modes1].set(out_modes)
    return jnp.fft.irfft(out_ft, n=N, axis=-1)


if __name__ == "__main__":
    # Small shapes consistent with the module's forward.
    B, Cin, Cout, N, modes1 = 2, 4, 4, 16, 4

    key = jax.random.PRNGKey(0)
    kx, kwr, kwi = jax.random.split(key, 3)

    x = jax.random.normal(kx, (B, Cin, N), dtype=jnp.float32)

    # Parameter init mirrors torch: scale * rand(Cin, Cout, modes1, cfloat)
    # (real and imag parts each uniform in [0, 1)).
    scale = np.sqrt(2.0 / (Cin + Cout)).astype(np.float32)
    w_real = scale * jax.random.uniform(kwr, (Cin, Cout, modes1), dtype=jnp.float32)
    w_imag = scale * jax.random.uniform(kwi, (Cin, Cout, modes1), dtype=jnp.float32)

    out = spectral_conv1d_pro(x, w_real, w_imag, modes1)
    out = jax.block_until_ready(out)

    ref = jax.block_until_ready(_reference(x, w_real, w_imag, modes1))
    assert out.shape == (B, Cout, N), out.shape
    np.testing.assert_allclose(np.asarray(out), np.asarray(ref),
                               rtol=1e-4, atol=1e-5)

    print("KERNEL_OK")
</pallas_src>

<mosaic_0001>
module attributes {stable_mosaic.version = 11 : i64} {
  func.func @_spectral_mul_kernel(%arg0: i32, %arg1: memref<2x4x128xf32, #tpu.memory_space<vmem>>, %arg2: memref<2x4x128xf32, #tpu.memory_space<vmem>>, %arg3: memref<4x4x128xf32, #tpu.memory_space<vmem>>, %arg4: memref<4x4x128xf32, #tpu.memory_space<vmem>>, %arg5: memref<2x4x128xf32, #tpu.memory_space<vmem>>, %arg6: memref<2x4x128xf32, #tpu.memory_space<vmem>>) attributes {dimension_semantics = [#tpu.dimension_semantics<parallel>], iteration_bounds = array<i64: 1>, scalar_prefetch = 0 : i64, scratch_operands = 0 : i64, tpu.core_type = #tpu.core_type<tc>, window_params = [{transform_indices = @transform_0, window_bounds = array<i64: 2, 4, 128>}, {transform_indices = @transform_1, window_bounds = array<i64: 2, 4, 128>}, {transform_indices = @transform_2, window_bounds = array<i64: 4, 4, 128>}, {transform_indices = @transform_3, window_bounds = array<i64: 4, 4, 128>}, {transform_indices = @transform_4, window_bounds = array<i64: 2, 4, 128>}, {transform_indices = @transform_5, window_bounds = array<i64: 2, 4, 128>}]} {
    %c0 = arith.constant 0 : index
    %c0_0 = arith.constant 0 : index
    %c0_1 = arith.constant 0 : index
    %0 = vector.load %arg1[%c0, %c0_0, %c0_1] : memref<2x4x128xf32, #tpu.memory_space<vmem>>, vector<2x4x128xf32>
    %c0_2 = arith.constant 0 : index
    %c0_3 = arith.constant 0 : index
    %c0_4 = arith.constant 0 : index
    %1 = vector.load %arg2[%c0_2, %c0_3, %c0_4] : memref<2x4x128xf32, #tpu.memory_space<vmem>>, vector<2x4x128xf32>
    %c0_5 = arith.constant 0 : index
    %c0_6 = arith.constant 0 : index
    %c0_7 = arith.constant 0 : index
    %2 = vector.load %arg3[%c0_5, %c0_6, %c0_7] : memref<4x4x128xf32, #tpu.memory_space<vmem>>, vector<4x4x128xf32>
    %c0_8 = arith.constant 0 : index
    %c0_9 = arith.constant 0 : index
    %c0_10 = arith.constant 0 : index
    %3 = vector.load %arg4[%c0_8, %c0_9, %c0_10] : memref<4x4x128xf32, #tpu.memory_space<vmem>>, vector<4x4x128xf32>
    %cst = arith.constant 0.000000e+00 : f32
    %4 = vector.broadcast %cst : f32 to vector<2x4x128xf32>
    %cst_11 = arith.constant 0.000000e+00 : f32
    %5 = vector.broadcast %cst_11 : f32 to vector<2x4x128xf32>
    %6 = vector.extract_strided_slice %0 {offsets = [0, 0, 0], sizes = [2, 1, 128], strides = [1, 1, 1]} : vector<2x4x128xf32> to vector<2x1x128xf32>
    %7 = vector.shape_cast %6 : vector<2x1x128xf32> to vector<2x128xf32>
    %8 = vector.shape_cast %7 : vector<2x128xf32> to vector<2x1x128xf32>
    %9 = vector.extract_strided_slice %1 {offsets = [0, 0, 0], sizes = [2, 1, 128], strides = [1, 1, 1]} : vector<2x4x128xf32> to vector<2x1x128xf32>
    %10 = vector.shape_cast %9 : vector<2x1x128xf32> to vector<2x128xf32>
    %11 = vector.shape_cast %10 : vector<2x128xf32> to vector<2x1x128xf32>
    %12 = vector.extract_strided_slice %2 {offsets = [0, 0, 0], sizes = [1, 4, 128], strides = [1, 1, 1]} : vector<4x4x128xf32> to vector<1x4x128xf32>
    %13 = vector.shape_cast %12 : vector<1x4x128xf32> to vector<4x128xf32>
    %14 = vector.shape_cast %13 : vector<4x128xf32> to vector<1x4x128xf32>
    %15 = vector.extract_strided_slice %3 {offsets = [0, 0, 0], sizes = [1, 4, 128], strides = [1, 1, 1]} : vector<4x4x128xf32> to vector<1x4x128xf32>
    %16 = vector.shape_cast %15 : vector<1x4x128xf32> to vector<4x128xf32>
    %17 = vector.shape_cast %16 : vector<4x128xf32> to vector<1x4x128xf32>
    %18 = vector.broadcast %8 : vector<2x1x128xf32> to vector<2x4x128xf32>
    %19 = vector.broadcast %14 : vector<1x4x128xf32> to vector<2x4x128xf32>
    %20 = arith.mulf %18, %19 : vector<2x4x128xf32>
    %21 = vector.broadcast %11 : vector<2x1x128xf32> to vector<2x4x128xf32>
    %22 = vector.broadcast %17 : vector<1x4x128xf32> to vector<2x4x128xf32>
    %23 = arith.mulf %21, %22 : vector<2x4x128xf32>
    %24 = arith.subf %20, %23 : vector<2x4x128xf32>
    %25 = arith.addf %4, %24 : vector<2x4x128xf32>
    %26 = vector.broadcast %8 : vector<2x1x128xf32> to vector<2x4x128xf32>
    %27 = vector.broadcast %17 : vector<1x4x128xf32> to vector<2x4x128xf32>
    %28 = arith.mulf %26, %27 : vector<2x4x128xf32>
    %29 = vector.broadcast %11 : vector<2x1x128xf32> to vector<2x4x128xf32>
    %30 = vector.broadcast %14 : vector<1x4x128xf32> to vector<2x4x128xf32>
    %31 = arith.mulf %29, %30 : vector<2x4x128xf32>
    %32 = arith.addf %28, %31 : vector<2x4x128xf32>
    %33 = arith.addf %5, %32 : vector<2x4x128xf32>
    %34 = vector.extract_strided_slice %0 {offsets = [0, 1, 0], sizes = [2, 1, 128], strides = [1, 1, 1]} : vector<2x4x128xf32> to vector<2x1x128xf32>
    %35 = vector.shape_cast %34 : vector<2x1x128xf32> to vector<2x128xf32>
    %36 = vector.shape_cast %35 : vector<2x128xf32> to vector<2x1x128xf32>
    %37 = vector.extract_strided_slice %1 {offsets = [0, 1, 0], sizes = [2, 1, 128], strides = [1, 1, 1]} : vector<2x4x128xf32> to vector<2x1x128xf32>
    %38 = vector.shape_cast %37 : vector<2x1x128xf32> to vector<2x128xf32>
    %39 = vector.shape_cast %38 : vector<2x128xf32> to vector<2x1x128xf32>
    %40 = vector.extract_strided_slice %2 {offsets = [1, 0, 0], sizes = [1, 4, 128], strides = [1, 1, 1]} : vector<4x4x128xf32> to vector<1x4x128xf32>
    %41 = vector.shape_cast %40 : vector<1x4x128xf32> to vector<4x128xf32>
    %42 = vector.shape_cast %41 : vector<4x128xf32> to vector<1x4x128xf32>
    %43 = vector.extract_strided_slice %3 {offsets = [1, 0, 0], sizes = [1, 4, 128], strides = [1, 1, 1]} : vector<4x4x128xf32> to vector<1x4x128xf32>
    %44 = vector.shape_cast %43 : vector<1x4x128xf32> to vector<4x128xf32>
    %45 = vector.shape_cast %44 : vector<4x128xf32> to vector<1x4x128xf32>
    %46 = vector.broadcast %36 : vector<2x1x128xf32> to vector<2x4x128xf32>
    %47 = vector.broadcast %42 : vector<1x4x128xf32> to vector<2x4x128xf32>
    %48 = arith.mulf %46, %47 : vector<2x4x128xf32>
    %49 = vector.broadcast %39 : vector<2x1x128xf32> to vector<2x4x128xf32>
    %50 = vector.broadcast %45 : vector<1x4x128xf32> to vector<2x4x128xf32>
    %51 = arith.mulf %49, %50 : vector<2x4x128xf32>
    %52 = arith.subf %48, %51 : vector<2x4x128xf32>
    %53 = arith.addf %25, %52 : vector<2x4x128xf32>
    %54 = vector.broadcast %36 : vector<2x1x128xf32> to vector<2x4x128xf32>
    %55 = vector.broadcast %45 : vector<1x4x128xf32> to vector<2x4x128xf32>
    %56 = arith.mulf %54, %55 : vector<2x4x128xf32>
    %57 = vector.broadcast %39 : vector<2x1x128xf32> to vector<2x4x128xf32>
    %58 = vector.broadcast %42 : vector<1x4x128xf32> to vector<2x4x128xf32>
    %59 = arith.mulf %57, %58 : vector<2x4x128xf32>
    %60 = arith.addf %56, %59 : vector<2x4x128xf32>
    %61 = arith.addf %33, %60 : vector<2x4x128xf32>
    %62 = vector.extract_strided_slice %0 {offsets = [0, 2, 0], sizes = [2, 1, 128], strides = [1, 1, 1]} : vector<2x4x128xf32> to vector<2x1x128xf32>
    %63 = vector.shape_cast %62 : vector<2x1x128xf32> to vector<2x128xf32>
    %64 = vector.shape_cast %63 : vector<2x128xf32> to vector<2x1x128xf32>
    %65 = vector.extract_strided_slice %1 {offsets = [0, 2, 0], sizes = [2, 1, 128], strides = [1, 1, 1]} : vector<2x4x128xf32> to vector<2x1x128xf32>
    %66 = vector.shape_cast %65 : vector<2x1x128xf32> to vector<2x128xf32>
    %67 = vector.shape_cast %66 : vector<2x128xf32> to vector<2x1x128xf32>
    %68 = vector.extract_strided_slice %2 {offsets = [2, 0, 0], sizes = [1, 4, 128], strides = [1, 1, 1]} : vector<4x4x128xf32> to vector<1x4x128xf32>
    %69 = vector.shape_cast %68 : vector<1x4x128xf32> to vector<4x128xf32>
    %70 = vector.shape_cast %69 : vector<4x128xf32> to vector<1x4x128xf32>
    %71 = vector.extract_strided_slice %3 {offsets = [2, 0, 0], sizes = [1, 4, 128], strides = [1, 1, 1]} : vector<4x4x128xf32> to vector<1x4x128xf32>
    %72 = vector.shape_cast %71 : vector<1x4x128xf32> to vector<4x128xf32>
    %73 = vector.shape_cast %72 : vector<4x128xf32> to vector<1x4x128xf32>
    %74 = vector.broadcast %64 : vector<2x1x128xf32> to vector<2x4x128xf32>
    %75 = vector.broadcast %70 : vector<1x4x128xf32> to vector<2x4x128xf32>
    %76 = arith.mulf %74, %75 : vector<2x4x128xf32>
    %77 = vector.broadcast %67 : vector<2x1x128xf32> to vector<2x4x128xf32>
    %78 = vector.broadcast %73 : vector<1x4x128xf32> to vector<2x4x128xf32>
    %79 = arith.mulf %77, %78 : vector<2x4x128xf32>
    %80 = arith.subf %76, %79 : vector<2x4x128xf32>
    %81 = arith.addf %53, %80 : vector<2x4x128xf32>
    %82 = vector.broadcast %64 : vector<2x1x128xf32> to vector<2x4x128xf32>
    %83 = vector.broadcast %73 : vector<1x4x128xf32> to vector<2x4x128xf32>
    %84 = arith.mulf %82, %83 : vector<2x4x128xf32>
    %85 = vector.broadcast %67 : vector<2x1x128xf32> to vector<2x4x128xf32>
    %86 = vector.broadcast %70 : vector<1x4x128xf32> to vector<2x4x128xf32>
    %87 = arith.mulf %85, %86 : vector<2x4x128xf32>
    %88 = arith.addf %84, %87 : vector<2x4x128xf32>
    %89 = arith.addf %61, %88 : vector<2x4x128xf32>
    %90 = vector.extract_strided_slice %0 {offsets = [0, 3, 0], sizes = [2, 1, 128], strides = [1, 1, 1]} : vector<2x4x128xf32> to vector<2x1x128xf32>
    %91 = vector.shape_cast %90 : vector<2x1x128xf32> to vector<2x128xf32>
    %92 = vector.shape_cast %91 : vector<2x128xf32> to vector<2x1x128xf32>
    %93 = vector.extract_strided_slice %1 {offsets = [0, 3, 0], sizes = [2, 1, 128], strides = [1, 1, 1]} : vector<2x4x128xf32> to vector<2x1x128xf32>
    %94 = vector.shape_cast %93 : vector<2x1x128xf32> to vector<2x128xf32>
    %95 = vector.shape_cast %94 : vector<2x128xf32> to vector<2x1x128xf32>
    %96 = vector.extract_strided_slice %2 {offsets = [3, 0, 0], sizes = [1, 4, 128], strides = [1, 1, 1]} : vector<4x4x128xf32> to vector<1x4x128xf32>
    %97 = vector.shape_cast %96 : vector<1x4x128xf32> to vector<4x128xf32>
    %98 = vector.shape_cast %97 : vector<4x128xf32> to vector<1x4x128xf32>
    %99 = vector.extract_strided_slice %3 {offsets = [3, 0, 0], sizes = [1, 4, 128], strides = [1, 1, 1]} : vector<4x4x128xf32> to vector<1x4x128xf32>
    %100 = vector.shape_cast %99 : vector<1x4x128xf32> to vector<4x128xf32>
    %101 = vector.shape_cast %100 : vector<4x128xf32> to vector<1x4x128xf32>
    %102 = vector.broadcast %92 : vector<2x1x128xf32> to vector<2x4x128xf32>
    %103 = vector.broadcast %98 : vector<1x4x128xf32> to vector<2x4x128xf32>
    %104 = arith.mulf %102, %103 : vector<2x4x128xf32>
    %105 = vector.broadcast %95 : vector<2x1x128xf32> to vector<2x4x128xf32>
    %106 = vector.broadcast %101 : vector<1x4x128xf32> to vector<2x4x128xf32>
    %107 = arith.mulf %105, %106 : vector<2x4x128xf32>
    %108 = arith.subf %104, %107 : vector<2x4x128xf32>
    %109 = arith.addf %81, %108 : vector<2x4x128xf32>
    %110 = vector.broadcast %92 : vector<2x1x128xf32> to vector<2x4x128xf32>
    %111 = vector.broadcast %101 : vector<1x4x128xf32> to vector<2x4x128xf32>
    %112 = arith.mulf %110, %111 : vector<2x4x128xf32>
    %113 = vector.broadcast %95 : vector<2x1x128xf32> to vector<2x4x128xf32>
    %114 = vector.broadcast %98 : vector<1x4x128xf32> to vector<2x4x128xf32>
    %115 = arith.mulf %113, %114 : vector<2x4x128xf32>
    %116 = arith.addf %112, %115 : vector<2x4x128xf32>
    %117 = arith.addf %89, %116 : vector<2x4x128xf32>
    %c0_12 = arith.constant 0 : index
    %c0_13 = arith.constant 0 : index
    %c0_14 = arith.constant 0 : index
    %118 = vector.load %arg5[%c0_12, %c0_13, %c0_14] : memref<2x4x128xf32, #tpu.memory_space<vmem>>, vector<2x4x128xf32>
    tpu.vector_store %arg5[%c0_12, %c0_13, %c0_14], %109 {strides = array<i32>} : memref<2x4x128xf32, #tpu.memory_space<vmem>>, vector<2x4x128xf32>,
    %c0_15 = arith.constant 0 : index
    %c0_16 = arith.constant 0 : index
    %c0_17 = arith.constant 0 : index
    %119 = vector.load %arg6[%c0_15, %c0_16, %c0_17] : memref<2x4x128xf32, #tpu.memory_space<vmem>>, vector<2x4x128xf32>
    tpu.vector_store %arg6[%c0_15, %c0_16, %c0_17], %117 {strides = array<i32>} : memref<2x4x128xf32, #tpu.memory_space<vmem>>, vector<2x4x128xf32>,
    return
  }
  func.func @transform_0(%arg0: i32) -> (i32, i32, i32) {
    %c0_i32 = arith.constant 0 : i32
    %c0_i32_0 = arith.constant 0 : i32
    %c0_i32_1 = arith.constant 0 : i32
    return %c0_i32, %c0_i32_0, %arg0 : i32, i32, i32
  }
  func.func @transform_1(%arg0: i32) -> (i32, i32, i32) {
    %c0_i32 = arith.constant 0 : i32
    %c0_i32_0 = arith.constant 0 : i32
    %c0_i32_1 = arith.constant 0 : i32
    return %c0_i32, %c0_i32_0, %arg0 : i32, i32, i32
  }
  func.func @transform_2(%arg0: i32) -> (i32, i32, i32) {
    %c0_i32 = arith.constant 0 : i32
    %c0_i32_0 = arith.constant 0 : i32
    %c0_i32_1 = arith.constant 0 : i32
    return %c0_i32, %c0_i32_0, %arg0 : i32, i32, i32
  }
  func.func @transform_3(%arg0: i32) -> (i32, i32, i32) {
    %c0_i32 = arith.constant 0 : i32
    %c0_i32_0 = arith.constant 0 : i32
    %c0_i32_1 = arith.constant 0 : i32
    return %c0_i32, %c0_i32_0, %arg0 : i32, i32, i32
  }
  func.func @transform_4(%arg0: i32) -> (i32, i32, i32) {
    %c0_i32 = arith.constant 0 : i32
    %c0_i32_0 = arith.constant 0 : i32
    %c0_i32_1 = arith.constant 0 : i32
    return %c0_i32, %c0_i32_0, %arg0 : i32, i32, i32
  }
  func.func @transform_5(%arg0: i32) -> (i32, i32, i32) {
    %c0_i32 = arith.constant 0 : i32
    %c0_i32_0 = arith.constant 0 : i32
    %c0_i32_1 = arith.constant 0 : i32
    return %c0_i32, %c0_i32_0, %arg0 : i32, i32, i32
  }
}

</mosaic_0001>

<bundles_post_ra>
// kernel: tpu_custom_call.1
= control target key start
LH: loop header
LB: loop body
LE: loop exit
PB: predicated region body
PF: predicated region fallthrough
CT: control target
= control target key end

     0   :  { %11 = vsyncpa [#allocation3], 0  ;;  %s530_s0 = inlined_call_operand.hbm [shape: f32[2,4,128], index: 0, kind: input, shape index: {}]   ;;  %s531_s1 = inlined_call_operand.hbm [shape: f32[2,4,128], index: 1, kind: input, shape index: {}]   ;;  %s532_s2 = inlined_call_operand.hbm [shape: f32[4,4,128], index: 2, kind: input, shape index: {}]   ;;  %s533_s3 = inlined_call_operand.hbm [shape: f32[4,4,128], index: 3, kind: input, shape index: {}]   ;;  %s534_s4 = inlined_call_operand.hbm [shape: f32[2,4,128], index: 4, kind: output, shape index: {0}]   ;;  %s535_s5 = inlined_call_operand.hbm [shape: f32[2,4,128], index: 5, kind: output, shape index: {1}]  }
   0x1   :  { %12 = vsyncpa [#allocation6], 0 }
   0x2   :  { %13 = vsyncpa [#allocation9], 0 }
   0x3   :  { %14 = vsyncpa [#allocation4], 0 }
   0x4   :  { %15 = vsyncpa [#allocation12], 0  ;;  %s33_s20 = sshll.u32 %s531_s1, 4  ;;  %s381_s21 = smov [#allocation5]   ;;  %s34_s20 = int_to_ptr.hbm [resolvable:$true] %s33_s20 }
   0x5   :  { %s35_s22 = sshll.u32 %s381_s21, 4  ;;  %s20_s25 = sshll.u32 %s530_s0, 4  ;;  %s36_s22 = int_to_ptr.vmem [resolvable:$true] %s35_s22  ;;  %s21_s25 = int_to_ptr.hbm [resolvable:$true] %s20_s25 }
   0x6   :  { %s382_s26 = smov 64   ;;  %s383_s27 = smov 4  }
   0x7   :  { %41 = dma.hbm_to_vmem [thread:$0]  %s34_s20, 128, %s36_s22, [#allocation6], %s382_s26, %s382_s26, %s383_s27  }
   0x8   :  { %s384_s28 = smov [#allocation2]   ;;  %s46_s1 = sshll.u32 %s532_s2, 4  ;;  %s47_s1 = int_to_ptr.hbm [resolvable:$true] %s46_s1 }
   0x9   :  { %s22_s29 = sshll.u32 %s384_s28, 4  ;;  %s59_s8 = sshll.u32 %s533_s3, 4  ;;  %s23_s29 = int_to_ptr.vmem [resolvable:$true] %s22_s29  ;;  %s60_s8 = int_to_ptr.hbm [resolvable:$true] %s59_s8 }
   0xa   :  { %28 = dma.hbm_to_vmem [thread:$0]  %s21_s25, 128, %s23_s29, [#allocation3], %s382_s26, %s382_s26, %s383_s27  }
   0xb   :  { %s385_s9 = smov [#allocation7]   ;;  %s386_s11 = smov [#allocation8]  }
   0xc   :  { %s48_s10 = sshll.u32 %s385_s9, 4  ;;  %s61_s2 = sshll.u32 %s386_s11, 4  ;;  %s49_s10 = int_to_ptr.vmem [resolvable:$true] %s48_s10  ;;  %s62_s2 = int_to_ptr.vmem [resolvable:$true] %s61_s2 }
   0xd   :  { %54 = dma.hbm_to_vmem [thread:$0]  %s47_s1, 256, %s49_s10, [#allocation6], %s382_s26, %s382_s26, %s383_s27  }
   0xe   :  { %67 = dma.hbm_to_vmem [thread:$0]  %s60_s8, 256, %s62_s2, [#allocation9], %s382_s26, %s382_s26, %s383_s27  }
   0xf   :  { %371 = dma.done.wait [#allocation3], 128  }
  0x10   :  { %372 = vsyncadd [#allocation3], 4294967168 }
  0x11   :  { %373 = dma.done.wait [#allocation6], 384  }
  0x12   :  { %374 = vsyncadd [#allocation6], 4294966912 }
  0x13   :  { %375 = dma.done.wait [#allocation9], 256  }
  0x14   :  { %376 = vsyncadd [#allocation9], 4294967040  ;;  %v443_v0 = vld [vmem:[#allocation2] sm:$0xf]  ;;  %v445_v1 = vld [vmem:[#allocation5] sm:$0xf] }
  0x15   :  { %v447_v2 = vld [vmem:[#allocation7] sm:$0xf]  ;;  %v449_v3 = vld [vmem:[#allocation7 + $0x4] sm:$0xf]  ;;  %v451_v4 = vld [vmem:[#allocation7 + $0x8] sm:$0xf] }
  0x16   :  { %v453_v5 = vld [vmem:[#allocation7 + $0xc] sm:$0xf]  ;;  %v455_v6 = vld [vmem:[#allocation8] sm:$0xf]  ;;  %v457_v7 = vld [vmem:[#allocation8 + $0x4] sm:$0xf] }
  0x17   :  { %v459_v8 = vld [vmem:[#allocation8 + $0x8] sm:$0xf]  ;;  %v461_v9 = vld [vmem:[#allocation8 + $0xc] sm:$0xf]  ;;  %v96_v10 = vperm.slane %v443_v0, 0  ;;  %v100_v11 = vperm.slane %v445_v1, 0 }
  0x18   :  { %v116_v12 = vperm.slane %v443_v0, 1  ;;  %v120_v13 = vperm.slane %v445_v1, 1  ;;  %v136_v14 = vperm.slane %v443_v0, 2  ;;  %v140_v15 = vperm.slane %v445_v1, 2  ;;  %v471_v18 = vld [vmem:[#allocation2 + $0x4] sm:$0xf] }
  0x19   :  { %v156_v16 = vperm.slane %v443_v0, 3  ;;  %v160_v17 = vperm.slane %v445_v1, 3  ;;  %v98_v19 = vmul.f32 %v96_v10, %v447_v2  ;;  %v102_v20 = vmul.f32 %v100_v11, %v455_v6  ;;  %v477_v23 = vld [vmem:[#allocation5 + $0x4] sm:$0xf]  ;;  %s387_s3 = smov [#allocation10]   ;;  %s186_s15 = sshll.u32 %s534_s4, 4  ;;  %s187_s15 = int_to_ptr.hbm [resolvable:$true] %s186_s15 }
  0x1a   :  { %v118_v21 = vmul.f32 %v116_v12, %v449_v3  ;;  %v122_v22 = vmul.f32 %v120_v13, %v457_v7  ;;  %v138_v24 = vmul.f32 %v136_v14, %v451_v4  ;;  %v142_v25 = vmul.f32 %v140_v15, %v459_v8  ;;  %s506_s12 = sshll.u32 %s387_s3, 4  ;;  %s388_s4 = smov [#allocation11]   ;;  %s185_s12 = int_to_ptr.vmem [resolvable:$true] %s506_s12 }
  0x1b   :  { %v158_v26 = vmul.f32 %v156_v16, %v453_v5  ;;  %v162_v27 = vmul.f32 %v160_v17, %v461_v9  ;;  %v104_v28 = vsub.f32 %v98_v19, %v102_v20  ;;  %v97_v30 = vperm.slane %v471_v18, 0  ;;  %s197_s16 = sshll.u32 %s388_s4, 4  ;;  %s199_s19 = sshll.u32 %s535_s5, 4  ;;  %s198_s16 = int_to_ptr.vmem [resolvable:$true] %s197_s16  ;;  %s200_s19 = int_to_ptr.hbm [resolvable:$true] %s199_s19 }
  0x1c   :  { %v124_v29 = vsub.f32 %v118_v21, %v122_v22  ;;  %v101_v31 = vperm.slane %v477_v23, 0  ;;  %v144_v32 = vsub.f32 %v138_v24, %v142_v25  ;;  %v117_v34 = vperm.slane %v471_v18, 1 }
  0x1d   :  { %v164_v33 = vsub.f32 %v158_v26, %v162_v27  ;;  %v121_v35 = vperm.slane %v477_v23, 1  ;;  %v99_v37 = vmul.f32 %v97_v30, %v447_v2  ;;  %v137_v39 = vperm.slane %v471_v18, 2 }
  0x1e   :  { %v126_v36 = vadd.f32 %v124_v29, %v104_v28  ;;  %v103_v38 = vmul.f32 %v101_v31, %v455_v6  ;;  %v119_v40 = vmul.f32 %v117_v34, %v449_v3  ;;  %v141_v42 = vperm.slane %v477_v23, 2 }
  0x1f   :  { %v123_v41 = vmul.f32 %v121_v35, %v457_v7  ;;  %v157_v43 = vperm.slane %v471_v18, 3  ;;  %v139_v46 = vmul.f32 %v137_v39, %v451_v4  ;;  %v161_v47 = vperm.slane %v477_v23, 3 }
  0x20   :  { %v146_v44 = vadd.f32 %v144_v32, %v126_v36  ;;  %v105_v45 = vsub.f32 %v99_v37, %v103_v38  ;;  %v143_v49 = vmul.f32 %v141_v42, %v459_v8  ;;  %v108_v51 = vmul.f32 %v96_v10, %v455_v6 }
  0x21   :  { %v125_v48 = vsub.f32 %v119_v40, %v123_v41  ;;  %v159_v50 = vmul.f32 %v157_v43, %v453_v5  ;;  %v163_v53 = vmul.f32 %v161_v47, %v461_v9  ;;  %v110_v54 = vmul.f32 %v100_v11, %v447_v2 }
  0x22   :  { %v166_v52 = vadd.f32 %v164_v33, %v146_v44  ;;  %v128_v55 = vmul.f32 %v116_v12, %v457_v7  ;;  %v145_v57 = vsub.f32 %v139_v46, %v143_v49  ;;  %v130_v58 = vmul.f32 %v120_v13, %v449_v3 }
  0x23   :  { %v127_v56 = vadd.f32 %v125_v48, %v105_v45  ;;  %v148_v59 = vmul.f32 %v136_v14, %v459_v8  ;;  %v165_v60 = vsub.f32 %v159_v50, %v163_v53  ;;  %v112_v61 = vadd.f32 %v110_v54, %v108_v51 }
  0x24   :  { %176 = vst [vmem:[#allocation10] sm:$0xf] %v166_v52  ;;  %v150_v62 = vmul.f32 %v140_v15, %v451_v4  ;;  %v168_v63 = vmul.f32 %v156_v16, %v461_v9  ;;  %v132_v1 = vadd.f32 %v130_v58, %v128_v55  ;;  %v170_v10 = vmul.f32 %v160_v17, %v453_v5 }
  0x25   :  { %v147_v0 = vadd.f32 %v145_v57, %v127_v56  ;;  %v109_v11 = vmul.f32 %v97_v30, %v455_v6  ;;  %v111_v13 = vmul.f32 %v101_v31, %v447_v2  ;;  %v129_v14 = vmul.f32 %v117_v34, %v457_v7 }
  0x26   :  { %v152_v12 = vadd.f32 %v150_v62, %v148_v59  ;;  %v131_v15 = vmul.f32 %v121_v35, %v449_v3  ;;  %v134_v18 = vadd.f32 %v132_v1, %v112_v61  ;;  %v172_v19 = vadd.f32 %v170_v10, %v168_v63 }
  0x27   :  { %v167_v16 = vadd.f32 %v165_v60, %v147_v0  ;;  %v149_v20 = vmul.f32 %v137_v39, %v459_v8  ;;  %v113_v21 = vadd.f32 %v111_v13, %v109_v11  ;;  %v151_v17 = vmul.f32 %v141_v42, %v451_v4 }
  0x28   :  { %v133_v22 = vadd.f32 %v131_v15, %v129_v14  ;;  %v169_v6 = vmul.f32 %v157_v43, %v461_v9  ;;  %v154_v23 = vadd.f32 %v152_v12, %v134_v18  ;;  %v171_v2 = vmul.f32 %v161_v47, %v453_v5 }
  0x29   :  { %177 = vst [vmem:[#allocation10 + $0x4] sm:$0xf] %v167_v16  ;;  %v153_v24 = vadd.f32 %v151_v17, %v149_v20 }
  0x2a   :  { %v135_v7 = vadd.f32 %v133_v22, %v113_v21  ;;  %192 = dma.vmem_to_hbm [thread:$0]  %s185_s12, 128, %s187_s15, [#allocation4], %s382_s26, %s382_s26, %s383_s27   ;;  %v174_v3 = vadd.f32 %v172_v19, %v154_v23  ;;  %v173_v8 = vadd.f32 %v171_v2, %v169_v6 }
  0x2c   :  { %v155_v4 = vadd.f32 %v153_v24, %v135_v7  ;;  %178 = vst [vmem:[#allocation11] sm:$0xf] %v174_v3 }
  0x2e   :  { %v175_v9 = vadd.f32 %v173_v8, %v155_v4 }
  0x30   :  { %179 = vst [vmem:[#allocation11 + $0x4] sm:$0xf] %v175_v9 }
  0x31   :  { %205 = dma.vmem_to_hbm [thread:$0]  %s198_s16, 128, %s200_s19, [#allocation12], %s382_s26, %s382_s26, %s383_s27  }
  0x32   :  { %377 = dma.done.wait [#allocation4], 128  }
  0x33   :  { %378 = vsyncadd [#allocation4], 4294967168 }
  0x34   :  { %379 = dma.done.wait [#allocation12], 128  }
  0x35   :  { %380 = vsyncadd [#allocation12], 4294967168 }
  0x36   :  { %214 = vsyncpa [#allocation3], 1 }
  0x37   :  { %215 = vsyncpa [#allocation6], 1 }
  0x38   :  { %216 = vsyncpa [#allocation9], 1 }
  0x39   :  { %217 = vsyncpa [#allocation4], 1 }
  0x3a   :  { %218 = vsyncpa [#allocation12], 1 }

</bundles_post_ra>
